<compile_context>
chip_gen: v6e
topology: v6e:2x2x1
jax: 0.10.0
libtpu: 0.0.40
codegen_flags: <defaults>
</compile_context>

<pallas_src>
import functools

import jax
import jax.numpy as jnp
from jax.experimental import pallas as pl
from jax.experimental.pallas import tpu as pltpu


_GELU_C = 0.7978845608028654   # sqrt(2 / pi), hoisted
_GELU_A = 0.044715


def _gelu_new(x):
    # GPT-2 "gelu_new": 0.5*x*(1+tanh(sqrt(2/pi)*(x+0.044715*x^3)))
    u = _GELU_C * (x + _GELU_A * (x * x * x))
    return 0.5 * x * (1.0 + jnp.tanh(u))      # tanh -> EUP slot


# --------------------------------------------------------------------------- #
# Kernels
# --------------------------------------------------------------------------- #
def gpt2_mlp_kernel_resident(x_ref, w1_ref, b1_ref, w2_ref, b2_ref, o_ref):
    # Weights fully VMEM-resident; one grid axis over token tiles.
    h = jnp.dot(x_ref[...], w1_ref[...], preferred_element_type=jnp.float32)
    h = _gelu_new(h + b1_ref[...])
    y = jnp.dot(h.astype(w2_ref.dtype), w2_ref[...],
                preferred_element_type=jnp.float32) + b2_ref[...]
    o_ref[...] = y.astype(o_ref.dtype)


def gpt2_mlp_kernel_streamed(x_ref, w1_ref, b1_ref, w2_ref, b2_ref, o_ref,
                             acc_ref, *, i_rem, ti):
    # x_ref:   (tm, E)   token tile (same block across k -> stays resident)
    # w1_ref:  (E, ti)   c_fc weight slice   (in, out), streamed over k
    # b1_ref:  (1, ti)   c_fc bias slice
    # w2_ref:  (ti, E)   c_proj weight slice (in, out), streamed over k
    # b2_ref:  (1, E)    c_proj bias
    # o_ref:   (tm, E)   output tile (resident across k)
    # acc_ref: (tm, E)   f32 accumulator scratch
    k = pl.program_id(1)
    num_k = pl.num_programs(1)

    @pl.when(k == 0)
    def _():
        # Seed the accumulator with the (broadcast) c_proj bias -> finalize is a store.
        acc_ref[...] = jnp.broadcast_to(
            b2_ref[...], acc_ref.shape).astype(jnp.float32)

    w2 = w2_ref[...]
    h = jnp.dot(x_ref[...], w1_ref[...], preferred_element_type=jnp.float32)
    h = _gelu_new(h + b1_ref[...])

    if i_rem:  # static: only emitted when I % ti != 0 (partial last k block)
        valid = jnp.where(k == num_k - 1, i_rem, ti)
        col = jax.lax.broadcasted_iota(jnp.int32, h.shape, 1)
        h = jnp.where(col < valid, h, 0.0)
        row = jax.lax.broadcasted_iota(jnp.int32, w2.shape, 0)
        w2 = jnp.where(row < valid, w2, jnp.zeros((), w2.dtype))

    acc_ref[...] += jnp.dot(h.astype(w2.dtype), w2,
                            preferred_element_type=jnp.float32)

    @pl.when(k == num_k - 1)
    def _():
        o_ref[...] = acc_ref[...].astype(o_ref.dtype)


# --------------------------------------------------------------------------- #
# Wrapper
# --------------------------------------------------------------------------- #
def _vmem_capacity_bytes():
    try:
        return int(pltpu.get_tpu_info().vmem_capacity_bytes)
    except Exception:
        return 64 << 20   # conservative fallback (v7x per-TC physical)


def _pick_reduction_tile(req, total):
    """(tile, tail_remainder): largest 128-aligned divisor of total <= req, else
    a 128-aligned tile with a masked tail."""
    if total <= req:
        return total, 0
    t = (min(req, total) // 128) * 128
    while t >= 128:
        if total % t == 0:
            return t, 0
        t -= 128
    t = min(max((min(req, total) // 128) * 128, 128), total)
    return t, total % t


@functools.partial(jax.jit,
                   static_argnames=("tm", "ti", "vmem_limit_mb", "force_streamed"))
def gpt2_mlp(hidden_states, w_fc, b_fc, w_proj, b_proj, *,
             tm=512, ti=512, vmem_limit_mb=None, force_streamed=False):
    """Fused GPT2 MLP forward.  tm: token-tile rows, ti: intermediate-dim tile."""
    B, S, E = hidden_states.shape
    I = w_fc.shape[1]
    M = B * S

    x2d = hidden_states.reshape(M, E)
    b_fc2d = b_fc.reshape(1, I)
    b_proj2d = b_proj.reshape(1, E)

    xsz = jnp.dtype(hidden_states.dtype).itemsize
    wsz = jnp.dtype(w_fc.dtype).itemsize

    # Token tile: clamp to M, keep sublane alignment (multiple of 8 or == M).
    tm = min(tm, M)
    if tm < M and tm % 8 != 0:
        tm = max(8, (tm // 8) * 8)

    vmem_cap = _vmem_capacity_bytes()
    if vmem_limit_mb is None:
        vmem_limit = int(min(vmem_cap, 128 << 20) * 0.85)
    else:
        vmem_limit = int(vmem_limit_mb) << 20

    # ---------------- weight-resident fast path ---------------- #
    resident_bytes = (
        2 * (w_fc.size * wsz + w_proj.size * wsz
             + I * jnp.dtype(b_fc.dtype).itemsize
             + E * jnp.dtype(b_proj.dtype).itemsize
             + 2 * tm * E * xsz)          # x + out tiles, double-buffered
        + 3 * tm * I * 4)                 # in-kernel (tm, I) f32 temporaries
    if (not force_streamed) and resident_bytes <= int(0.7 * vmem_limit):
        num_m = pl.cdiv(M, tm)
        out2d = pl.pallas_call(
            gpt2_mlp_kernel_resident,
            out_shape=jax.ShapeDtypeStruct((M, E), hidden_states.dtype),
            grid_spec=pltpu.PrefetchScalarGridSpec(
                num_scalar_prefetch=0,
                grid=(num_m,),
                in_specs=[
                    pl.BlockSpec((tm, E), lambda i: (i, 0)),   # X tile
                    pl.BlockSpec((E, I), lambda i: (0, 0)),    # W1 (DMA'd once)
                    pl.BlockSpec((1, I), lambda i: (0, 0)),    # b1
                    pl.BlockSpec((I, E), lambda i: (0, 0)),    # W2 (DMA'd once)
                    pl.BlockSpec((1, E), lambda i: (0, 0)),    # b2
                ],
                out_specs=pl.BlockSpec((tm, E), lambda i: (i, 0)),
            ),
            compiler_params=pltpu.CompilerParams(
                dimension_semantics=("parallel",),
                vmem_limit_bytes=vmem_limit),
        )(x2d, w_fc, b_fc2d, w_proj, b_proj2d)
        return out2d.reshape(B, S, E)

    # ---------------- streamed path (big weights) ---------------- #
    ti, i_rem = _pick_reduction_tile(min(ti, I), I)

    def _streamed_bytes(tm_, ti_):
        blocks = (tm_ * E * xsz            # x
                  + E * ti_ * wsz          # W1 slice
                  + ti_ * wsz              # b1 slice
                  + ti_ * E * wsz          # W2 slice
                  + E * wsz                # b2
                  + tm_ * E * xsz)         # out
        return 2 * blocks + tm_ * E * 4 + 3 * tm_ * ti_ * 4

    # Shrink tm until the double-buffered working set fits the VMEM limit
    # (keeps v7x's 64 MiB safe; v5e/v6e usually keep the full tile).
    while tm > 64 and _streamed_bytes(tm, ti) > int(0.8 * vmem_limit):
        tm = max(64, tm // 2)

    num_m = pl.cdiv(M, tm)
    num_k = pl.cdiv(I, ti)
    kernel = functools.partial(gpt2_mlp_kernel_streamed, i_rem=i_rem, ti=ti)

    out2d = pl.pallas_call(
        kernel,
        out_shape=jax.ShapeDtypeStruct((M, E), hidden_states.dtype),
        grid_spec=pltpu.PrefetchScalarGridSpec(
            num_scalar_prefetch=0,
            grid=(num_m, num_k),
            in_specs=[
                pl.BlockSpec((tm, E), lambda i, k: (i, 0)),   # X tile (resident over k)
                pl.BlockSpec((E, ti), lambda i, k: (0, k)),   # W1 slice, streamed
                pl.BlockSpec((1, ti), lambda i, k: (0, k)),   # b1 slice
                pl.BlockSpec((ti, E), lambda i, k: (k, 0)),   # W2 slice, streamed
                pl.BlockSpec((1, E), lambda i, k: (0, 0)),    # b2
            ],
            out_specs=pl.BlockSpec((tm, E), lambda i, k: (i, 0)),
            scratch_shapes=[pltpu.VMEM((tm, E), jnp.float32)],
        ),
        compiler_params=pltpu.CompilerParams(
            # token axis parallel (megacore on v7x), reduction axis last + arbitrary
            dimension_semantics=("parallel", "arbitrary"),
            vmem_limit_bytes=vmem_limit),
    )(x2d, w_fc, b_fc2d, w_proj, b_proj2d)
    return out2d.reshape(B, S, E)


def reference_mlp(hidden_states, w_fc, b_fc, w_proj, b_proj):
    h = hidden_states @ w_fc + b_fc
    h = _gelu_new(h)
    return h @ w_proj + b_proj


if __name__ == "__main__":
    # Small config consistent with GPT2MLP: hidden_size=32, intermediate=4*hidden,
    # batch=2, seq=8.
    B, S, E = 2, 8, 32
    I = 4 * E

    key = jax.random.PRNGKey(0)
    kx, k1, k2, k3, k4 = jax.random.split(key, 5)

    x = jax.random.normal(kx, (B, S, E), dtype=jnp.float32)
    # HF Conv1D: normal(0, 0.02) weights of shape (in, out); small nonzero biases
    # to exercise both bias adds.
    w_fc = 0.02 * jax.random.normal(k1, (E, I), dtype=jnp.float32)
    b_fc = 0.01 * jax.random.normal(k2, (I,), dtype=jnp.float32)
    w_proj = 0.02 * jax.random.normal(k3, (I, E), dtype=jnp.float32)
    b_proj = 0.01 * jax.random.normal(k4, (E,), dtype=jnp.float32)

    # 1) weight-resident fast path (small model -> weights fit in VMEM)
    out = jax.block_until_ready(gpt2_mlp(x, w_fc, b_fc, w_proj, b_proj))
    ref = reference_mlp(x, w_fc, b_fc, w_proj, b_proj)
    assert out.shape == (B, S, E)
    assert jnp.allclose(out, ref, atol=2e-4, rtol=2e-3), "resident path mismatch"

    # 2) streamed path with a partial reduction tile (I2 % ti != 0 -> tail masked)
    I2 = 192
    w_fc2 = 0.02 * jax.random.normal(k1, (E, I2), dtype=jnp.float32)
    b_fc2 = 0.01 * jax.random.normal(k2, (I2,), dtype=jnp.float32)
    w_proj2 = 0.02 * jax.random.normal(k3, (I2, E), dtype=jnp.float32)
    out2 = jax.block_until_ready(
        gpt2_mlp(x, w_fc2, b_fc2, w_proj2, b_proj, ti=128, force_streamed=True))
    ref2 = reference_mlp(x, w_fc2, b_fc2, w_proj2, b_proj)
    assert jnp.allclose(out2, ref2, atol=2e-4, rtol=2e-3), "streamed path mismatch"

    print("KERNEL_OK")
</pallas_src>

<mosaic_0001>
module attributes {stable_mosaic.version = 11 : i64} {
  func.func @gpt2_mlp_kernel_resident(%arg0: i32, %arg1: memref<16x32xf32, #tpu.memory_space<vmem>>, %arg2: memref<32x128xf32, #tpu.memory_space<vmem>>, %arg3: memref<1x128xf32, #tpu.memory_space<vmem>>, %arg4: memref<128x32xf32, #tpu.memory_space<vmem>>, %arg5: memref<1x32xf32, #tpu.memory_space<vmem>>, %arg6: memref<16x32xf32, #tpu.memory_space<vmem>>) attributes {dimension_semantics = [#tpu.dimension_semantics<parallel>], iteration_bounds = array<i64: 1>, scalar_prefetch = 0 : i64, scratch_operands = 0 : i64, tpu.core_type = #tpu.core_type<tc>, window_params = [{transform_indices = @transform_0, window_bounds = array<i64: 16, 32>}, {pipeline_mode = #tpu.pipeline_mode<synchronous>, transform_indices = @transform_1, window_bounds = array<i64: 32, 128>}, {pipeline_mode = #tpu.pipeline_mode<synchronous>, transform_indices = @transform_2, window_bounds = array<i64: 1, 128>}, {pipeline_mode = #tpu.pipeline_mode<synchronous>, transform_indices = @transform_3, window_bounds = array<i64: 128, 32>}, {pipeline_mode = #tpu.pipeline_mode<synchronous>, transform_indices = @transform_4, window_bounds = array<i64: 1, 32>}, {transform_indices = @transform_5, window_bounds = array<i64: 16, 32>}]} {
    %c0 = arith.constant 0 : index
    %c0_0 = arith.constant 0 : index
    %0 = vector.load %arg1[%c0, %c0_0] : memref<16x32xf32, #tpu.memory_space<vmem>>, vector<16x32xf32>
    %c0_1 = arith.constant 0 : index
    %c0_2 = arith.constant 0 : index
    %1 = vector.load %arg2[%c0_1, %c0_2] : memref<32x128xf32, #tpu.memory_space<vmem>>, vector<32x128xf32>
    %cst = arith.constant dense<0.000000e+00> : vector<16x128xf32>
    %2 = tpu.matmul %0, %1, %cst {dimension_numbers = #tpu.dot_dimension_numbers<[1], [0], [0], [1], [0, 0, 1, 1], [], []>} : vector<16x32xf32>, vector<32x128xf32>, vector<16x128xf32> -> vector<16x128xf32>
    %c0_3 = arith.constant 0 : index
    %c0_4 = arith.constant 0 : index
    %3 = vector.load %arg3[%c0_3, %c0_4] : memref<1x128xf32, #tpu.memory_space<vmem>>, vector<1x128xf32>
    %4 = vector.broadcast %3 : vector<1x128xf32> to vector<16x128xf32>
    %5 = arith.addf %2, %4 : vector<16x128xf32>
    %6 = arith.mulf %5, %5 : vector<16x128xf32>
    %7 = arith.mulf %6, %5 : vector<16x128xf32>
    %cst_5 = arith.constant 4.471500e-02 : f32
    %8 = vector.broadcast %cst_5 : f32 to vector<16x128xf32>
    %9 = arith.mulf %8, %7 : vector<16x128xf32>
    %10 = arith.addf %5, %9 : vector<16x128xf32>
    %cst_6 = arith.constant 0.797884583 : f32
    %11 = vector.broadcast %cst_6 : f32 to vector<16x128xf32>
    %12 = arith.mulf %11, %10 : vector<16x128xf32>
    %cst_7 = arith.constant 5.000000e-01 : f32
    %13 = vector.broadcast %cst_7 : f32 to vector<16x128xf32>
    %14 = arith.mulf %13, %5 : vector<16x128xf32>
    %15 = math.tanh %12 : vector<16x128xf32>
    %cst_8 = arith.constant 1.000000e+00 : f32
    %16 = vector.broadcast %cst_8 : f32 to vector<16x128xf32>
    %17 = arith.addf %16, %15 : vector<16x128xf32>
    %18 = arith.mulf %14, %17 : vector<16x128xf32>
    %c0_9 = arith.constant 0 : index
    %c0_10 = arith.constant 0 : index
    %19 = vector.load %arg4[%c0_9, %c0_10] : memref<128x32xf32, #tpu.memory_space<vmem>>, vector<128x32xf32>
    %cst_11 = arith.constant dense<0.000000e+00> : vector<16x32xf32>
    %20 = tpu.matmul %18, %19, %cst_11 {dimension_numbers = #tpu.dot_dimension_numbers<[1], [0], [0], [1], [0, 0, 1, 1], [], []>} : vector<16x128xf32>, vector<128x32xf32>, vector<16x32xf32> -> vector<16x32xf32>
    %c0_12 = arith.constant 0 : index
    %c0_13 = arith.constant 0 : index
    %21 = vector.load %arg5[%c0_12, %c0_13] : memref<1x32xf32, #tpu.memory_space<vmem>>, vector<1x32xf32>
    %22 = vector.broadcast %21 : vector<1x32xf32> to vector<16x32xf32>
    %23 = arith.addf %20, %22 : vector<16x32xf32>
    %c0_14 = arith.constant 0 : index
    %c0_15 = arith.constant 0 : index
    %24 = vector.load %arg6[%c0_14, %c0_15] : memref<16x32xf32, #tpu.memory_space<vmem>>, vector<16x32xf32>
    tpu.vector_store %arg6[%c0_14, %c0_15], %23 {strides = array<i32>} : memref<16x32xf32, #tpu.memory_space<vmem>>, vector<16x32xf32>,
    return
  }
  func.func @transform_0(%arg0: i32) -> (i32, i32) {
    %c0_i32 = arith.constant 0 : i32
    %c0_i32_0 = arith.constant 0 : i32
    return %arg0, %c0_i32 : i32, i32
  }
  func.func @transform_1(%arg0: i32) -> (i32, i32) {
    %c0_i32 = arith.constant 0 : i32
    %c0_i32_0 = arith.constant 0 : i32
    %c0_i32_1 = arith.constant 0 : i32
    return %c0_i32, %c0_i32_0 : i32, i32
  }
  func.func @transform_2(%arg0: i32) -> (i32, i32) {
    %c0_i32 = arith.constant 0 : i32
    %c0_i32_0 = arith.constant 0 : i32
    %c0_i32_1 = arith.constant 0 : i32
    return %c0_i32, %c0_i32_0 : i32, i32
  }
  func.func @transform_3(%arg0: i32) -> (i32, i32) {
    %c0_i32 = arith.constant 0 : i32
    %c0_i32_0 = arith.constant 0 : i32
    %c0_i32_1 = arith.constant 0 : i32
    return %c0_i32, %c0_i32_0 : i32, i32
  }
  func.func @transform_4(%arg0: i32) -> (i32, i32) {
    %c0_i32 = arith.constant 0 : i32
    %c0_i32_0 = arith.constant 0 : i32
    %c0_i32_1 = arith.constant 0 : i32
    return %c0_i32, %c0_i32_0 : i32, i32
  }
  func.func @transform_5(%arg0: i32) -> (i32, i32) {
    %c0_i32 = arith.constant 0 : i32
    %c0_i32_0 = arith.constant 0 : i32
    return %arg0, %c0_i32 : i32, i32
  }
}

</mosaic_0001>

<bundles_post_ra>
// kernel: gpt2_mlp.1
= control target key start
LH: loop header
LB: loop body
LE: loop exit
PB: predicated region body
PF: predicated region fallthrough
CT: control target
= control target key end

     0   :  { %vm34_vm0 = vcmask 261120   ;;  %s465_s0 = inlined_call_operand.vmem [shape: f32[16,32], index: 0, kind: input, shape index: {}]   ;;  %s466_s1 = inlined_call_operand.vmem [shape: f32[32,128], index: 1, kind: input, shape index: {}]   ;;  %s467_s2 = inlined_call_operand.vmem [shape: f32[1,128], index: 2, kind: input, shape index: {}]   ;;  %s468_s3 = inlined_call_operand.vmem [shape: f32[128,32], index: 3, kind: input, shape index: {}]   ;;  %s469_s4 = inlined_call_operand.vmem [shape: f32[1,32], index: 4, kind: input, shape index: {}]   ;;  %s470_s5 = inlined_call_operand.hbm [shape: f32[16,32], index: 5, kind: output, shape index: {}]  }
   0x1   :  { %v26_v0 = vld [vmem:[%s466_s1 + $0x18] sm:$0xff]  ;;  %v25_v1 = vld [vmem:[%s466_s1 + $0x10] sm:$0xff]  ;;  %v21_v2 = vld [vmem:[%s465_s0] sm:$0xff] }
   0x2   :  { %278 = vmatprep.subr.mxu0 %v26_v0  ;;  %v24_v3 = vld [vmem:[%s466_s1 + $0x8] sm:$0xff]  ;;  %286 = vmatprep.mubr.msk.f32.mxu0 %vm34_vm0, %v21_v2 }
   0x3   :  { %279 = vmatpush3.msra.mxu0 %v26_v0 }
   0x4   :  { %10 = vsyncpa [#allocation3], 0  ;;  %280 = vmatprep.subr.mxu0 %v25_v1  ;;  %v23_v4 = vld [vmem:[%s466_s1] sm:$0xff]  ;;  %v22_v5 = vld [vmem:[%s465_s0 + $0x8] sm:$0xff]  ;;  %s353_s10 = smov [#allocation2]  }
   0x5   :  { %281 = vmatpush3.msra.mxu0 %v25_v1  ;;  %v149_v6 = vld [vmem:[%s468_s3 + $0x78] sm:$0xff]  ;;  %v148_v7 = vld [vmem:[%s468_s3 + $0x70] sm:$0xff]  ;;  %v147_v8 = vld [vmem:[%s468_s3 + $0x68] sm:$0xff]  ;;  %s239_s11 = sshll.u32 %s353_s10, 4  ;;  %s240_s11 = int_to_ptr.vmem [resolvable:$true] %s239_s11 }
   0x6   :  { %282 = vmatprep.subr.mxu0 %v24_v3  ;;  %289 = vmatprep.subr.mxu1 %v149_v6  ;;  %v146_v9 = vld [vmem:[%s468_s3 + $0x60] sm:$0xff]  ;;  %v145_v10 = vld [vmem:[%s468_s3 + $0x58] sm:$0xff]  ;;  %v144_v11 = vld [vmem:[%s468_s3 + $0x50] sm:$0xff]  ;;  %s331_s12 = scalar_lea.vmem %s240_s11, 256  ;;  %p336_p1 = scmp.lt.s32.totalorder %s240_s11, %s240_s11 }
   0x7   :  { %283 = vmatpush3.msra.mxu0 %v24_v3  ;;  %290 = vmatpush3.msra.mxu1 %v149_v6  ;;  %v143_v12 = vld [vmem:[%s468_s3 + $0x48] sm:$0xff]  ;;  %v142_v13 = vld [vmem:[%s468_s3 + $0x40] sm:$0xff]  ;;  %v141_v14 = vld [vmem:[%s468_s3 + $0x38] sm:$0xff]  ;;  %p332_p0 = scmp.ne.s32.totalorder %s240_s11, %s331_s12  ;;  %p337_p2 = scmp.lt.s32.totalorder %s331_s12, %s331_s12 }
   0x8   :  { %284 = vmatprep.subr.mxu0 %v23_v4  ;;  %291 = vmatprep.subr.mxu1 %v148_v7  ;;  %v140_v15 = vld [vmem:[%s468_s3 + $0x30] sm:$0xff]  ;;  %v139_v16 = vld [vmem:[%s468_s3 + $0x28] sm:$0xff]  ;;  %v138_v17 = vld [vmem:[%s468_s3 + $0x20] sm:$0xff] }
   0x9   :  { %285 = vmatpush3.msra.mxu0 %v23_v4  ;;  %292 = vmatpush3.msra.mxu1 %v148_v7  ;;  %v137_v18 = vld [vmem:[%s468_s3 + $0x18] sm:$0xff]  ;;  %v136_v19 = vld [vmem:[%s468_s3 + $0x10] sm:$0xff]  ;;  %v135_v20 = vld [vmem:[%s468_s3 + $0x8] sm:$0xff]  ;;  %p338_p3 = por %p337_p2, %p336_p1 }
   0xa   :  { %287 = vmatmul.mubr.msk.f32.vlgmr.msra.gmra.mxu0 %vm34_vm0, %v22_v5  ;;  %293 = vmatprep.subr.mxu1 %v147_v8  ;;  %v134_v21 = vld [vmem:[%s468_s3] sm:$0xff] }
   0xb   :  { %294 = vmatpush3.msra.mxu1 %v147_v8  ;;  %v250_v22 = vld [vmem:[%s467_s2] ss:$0 sm:$0xff]  ;;  %p339_p4 = pnand %p338_p3, %p332_p0 }
   0xc   :  { %295 = vmatprep.subr.mxu1 %v146_v9  ;;  %v253_v45 = vld [vmem:[%s469_s4] ss:$0 sm:$0xff] }
   0xd   :  { %296 = vmatpush3.msra.mxu1 %v146_v9 }
   0xe   :  { %297 = vmatprep.subr.mxu1 %v145_v10 }
   0xf   :  { %298 = vmatpush3.msra.mxu1 %v145_v10 }
  0x10   :  { %299 = vmatprep.subr.mxu1 %v144_v11 }
  0x11   :  { %300 = vmatpush3.msra.mxu1 %v144_v11 }
  0x12   :  { %301 = vmatprep.subr.mxu1 %v143_v12 }
  0x13   :  { %302 = vmatpush3.msra.mxu1 %v143_v12 }
  0x14   :  { %303 = vmatprep.subr.mxu1 %v142_v13 }
  0x15   :  { %304 = vmatpush3.msra.mxu1 %v142_v13 }
  0x16   :  { %305 = vmatprep.subr.mxu1 %v141_v14 }
  0x17   :  { %306 = vmatpush3.msra.mxu1 %v141_v14 }
  0x18   :  { %307 = vmatprep.subr.mxu1 %v140_v15 }
  0x19   :  { %308 = vmatpush3.msra.mxu1 %v140_v15 }
  0x1a   :  { %309 = vmatprep.subr.mxu1 %v139_v16 }
  0x1b   :  { %310 = vmatpush3.msra.mxu1 %v139_v16 }
  0x1c   :  { %311 = vmatprep.subr.mxu1 %v138_v17 }
  0x1d   :  { %312 = vmatpush3.msra.mxu1 %v138_v17 }
  0x1e   :  { %313 = vmatprep.subr.mxu1 %v137_v18 }
  0x1f   :  { %314 = vmatpush3.msra.mxu1 %v137_v18 }
  0x20   :  { %315 = vmatprep.subr.mxu1 %v136_v19 }
  0x21   :  { %316 = vmatpush3.msra.mxu1 %v136_v19 }
  0x22   :  { %317 = vmatprep.subr.mxu1 %v135_v20 }
  0x23   :  { %318 = vmatpush3.msra.mxu1 %v135_v20 }
  0x24   :  { %319 = vmatprep.subr.mxu1 %v134_v21 }
  0x25   :  { %320 = vmatpush3.msra.mxu1 %v134_v21 }
  0xca   :  { %v288_v23 = vpop.f32.mrf.mxu0 }
  0xcb   :  { %v113_v24 = vadd.f32 %v288_v23, %v250_v22 }
  0xcc   :  { %v107_v25 = vpop.f32.mrf.mxu0 }
  0xcd   :  { %v117_v26 = vmul.f32 %v113_v24, %v113_v24  ;;  %v108_v27 = vadd.f32 %v250_v22, %v107_v25  ;;  %v127_v42 = vmul.f32 0.5, %v113_v24 }
  0xcf   :  { %v119_v28 = vmul.f32 %v117_v26, %v113_v24  ;;  %v116_v29 = vmul.f32 %v108_v27, %v108_v27  ;;  %v126_v40 = vmul.f32 0.5, %v108_v27 }
  0xd1   :  { %v121_v30 = vmul.f32 0.044715, %v119_v28  ;;  %v118_v31 = vmul.f32 %v116_v29, %v108_v27 }
  0xd3   :  { %v123_v32 = vadd.f32 %v121_v30, %v113_v24  ;;  %v120_v33 = vmul.f32 0.044715, %v118_v31 }
  0xd5   :  { %v125_v34 = vmul.f32 0.7978846, %v123_v32  ;;  %v122_v35 = vadd.f32 %v120_v33, %v108_v27 }
  0xd7   :  { %v124_v36 = vmul.f32 0.7978846, %v122_v35  ;;  %327 = vtanh.f32 %v125_v34 }
  0xd9   :  { %329 = vtanh.f32 %v124_v36 }
  0xe4   :  { %v328_v37 = vpop.eup %327 }
  0xe5   :  { %v131_v39 = vadd.f32 1.0, %v328_v37 }
  0xe6   :  { %v330_v38 = vpop.eup %329 }
  0xe7   :  { %v130_v41 = vadd.f32 1.0, %v330_v38  ;;  %v133_v44 = vmul.f32 %v131_v39, %v127_v42 }
  0xe9   :  { %v132_v43 = vmul.f32 %v130_v41, %v126_v40 }
  0xeb   :  { %321 = vmatprep.mubr.f32.mxu1 %v132_v43 }
  0xec   :  { %322 = vmatmul.mubr.f32.vlgmr.msra.gmra.mxu1 %v133_v44 }
 0x1ac   :  { %v323_v46 = vpop.f32.mrf.mxu1 }
 0x1ad   :  { %v229_v47 = vadd.f32 %v323_v46, %v253_v45 }
 0x1ae   :  { %v223_v48 = vpop.f32.mrf.mxu1 }
 0x1af   :  { %233 = vst.msk [vmem:[#allocation2 + $0x8] sm:$0xff] %vm34_vm0, %v229_v47  ;;  %v224_v49 = vadd.f32 %v253_v45, %v223_v48 }
 0x1b1   :  { %232 = vst.msk [vmem:[#allocation2] sm:$0xff] %vm34_vm0, %v224_v49 }
 0x1b2   :  { %342 = shalt.err (!%p339_p4)
}
 0x1b3   :  { %s354_s13 = smov 128   ;;  %s355_s4 = smov 8  }
 0x1b4   :  { %245 = dma.vmem_to_hbm [thread:$0]  %s240_s11, 256, %s470_s5, [#allocation3], %s354_s13, %s354_s13, %s355_s4  }
 0x1b5   :  { %351 = dma.done.wait [#allocation3], 256  }
 0x1b6   :  { %352 = vsyncadd [#allocation3], 4294967040 }
 0x1b7   :  { %249 = vsyncpa [#allocation3], 1 }

</bundles_post_ra>
